<compile_context>
chip_gen: v7x
topology: tpu7x:2x2x1
jax: 0.10.0
libtpu: 0.0.40
codegen_flags: <defaults>
</compile_context>

<pallas_src>
import math
import functools

import jax
import jax.numpy as jnp
from jax.experimental import pallas as pl
from jax.experimental.pallas import tpu as pltpu


def _qkv_attn_kernel(q_ref, k_ref, v_ref, o_ref, m_scr, l_scr, acc_scr,
                     *, scale2, hb, ch, approx_recip):
    """One grid step: `hb` heads of one batch element, one kv tile.

    q_ref:  (1, hb*ch, Tq)   packed query channels   (input dtype)
    k_ref:  (1, hb*ch, Tk)   packed key channels     (input dtype)
    v_ref:  (1, hb*ch, Tk)   packed value channels   (input dtype)
    o_ref:  (1, hb*ch, Tq)   output                  (input dtype)
    m_scr:  (hb, 1, Tq) f32  running row max
    l_scr:  (hb, 1, Tq) f32  running softmax denominator
    acc_scr:(hb, ch, Tq) f32 running (unnormalized) output accumulator
    """
    kv = pl.program_id(2)
    last_kv = pl.num_programs(2) - 1

    @pl.when(kv == 0)
    def _init():
        m_scr[...] = jnp.full(m_scr.shape, -jnp.inf, dtype=jnp.float32)
        l_scr[...] = jnp.zeros(l_scr.shape, dtype=jnp.float32)
        acc_scr[...] = jnp.zeros(acc_scr.shape, dtype=jnp.float32)

    tq = q_ref.shape[-1]
    tk = k_ref.shape[-1]

    q = q_ref[0].reshape(hb, ch, tq)   # native dtype, no f32 upcast
    k = k_ref[0].reshape(hb, ch, tk)
    v = v_ref[0].reshape(hb, ch, tk)

    # Fold the two-sided 1/ch**0.25 scaling into k (the kv-tile-sized operand):
    # each k element is scaled exactly once over the entire reduction, whereas
    # scaling q would redo an (hb*ch*Tq) multiply on every kv step.
    ks = k * jnp.asarray(scale2, dtype=k.dtype)

    # scores[h, s, t] = sum_c k[h,c,s] * q[h,c,t]  ->  (hb, Tk, Tq)
    # kv on sublanes, query on lanes: softmax stats broadcast against the
    # accumulator with no relayout.  f32 MXU accumulation, no transposes.
    s = jnp.einsum('hcs,hct->hst', ks, q,
                   preferred_element_type=jnp.float32)

    m_prev = m_scr[...]                                       # (hb, 1, Tq)
    m_new = jnp.maximum(m_prev, jnp.max(s, axis=-2, keepdims=True))
    alpha = jnp.exp(m_prev - m_new)                           # (hb, 1, Tq)
    p = jnp.exp(s - m_new)                                    # (hb, Tk, Tq) f32

    l_scr[...] = alpha * l_scr[...] + jnp.sum(p, axis=-2, keepdims=True)
    m_scr[...] = m_new

    # a[h, c, t] = sum_s v[h,c,s] * p[h,s,t]; probabilities are cast back to
    # the input dtype, matching torch softmax(weight.float()).type(dtype).
    pv = jnp.einsum('hcs,hst->hct', v, p.astype(v.dtype),
                    preferred_element_type=jnp.float32)       # (hb, ch, Tq)
    acc_scr[...] = alpha * acc_scr[...] + pv

    @pl.when(kv == last_kv)
    def _finalize():
        if approx_recip:
            inv_l = pl.reciprocal(l_scr[...], approx=True)    # EUP slot, ~free
        else:
            inv_l = 1.0 / l_scr[...]
        o_ref[0] = (acc_scr[...] * inv_l).reshape(hb * ch, tq).astype(o_ref.dtype)


def _tpu_vmem_info():
    """Per-TensorCore VMEM capacity + TensorCore count heuristic."""
    cap = None
    try:
        info = pltpu.get_tpu_info()
        for name in ("vmem_capacity_bytes", "vmem_bytes", "vmem_size_bytes"):
            val = getattr(info, name, None)
            if val:
                cap = int(val)
                break
    except Exception:
        cap = None
    if cap is None:
        cap = 64 * 1024 * 1024      # conservative fallback: v7x-sized VMEM
    # 64 MiB/core parts (v7x) have 2 TensorCores per chip; 128 MiB parts
    # (v5e/v6e) have 1.
    num_tc = 2 if cap <= 64 * 1024 * 1024 else 1
    return cap, num_tc


def _pick_kv_tile(length, one_shot_max=1024):
    """kv-axis tile: one shot for moderate T; otherwise the largest tile that
    divides T, preferring multiples of 256 (v6e/v7x MXUs are 256-deep) before
    multiples of 128."""
    if length <= one_shot_max:
        return length
    for cand in (1024, 768, 512, 256, 896, 640, 384, 128):
        if length % cand == 0:
            return cand
    # TODO(synk): pad T to a multiple of 128 with -inf kv masking instead of
    # this full-length fallback (unsupported for large ragged T on v7x).
    return length


def _pick_heads_per_block(bs, n_heads, ch, length, kv_tile, itemsize,
                          *, num_tc, vmem_budget):
    """Largest head block that satisfies layout rules, fits the VMEM budget,
    and (on dual-TensorCore chips only) keeps >= num_tc parallel grid steps."""
    pack = max(8, 32 // max(1, itemsize))   # sublane pack: 8 f32, 16 bf16, 32 int8

    divisors = [hb for hb in range(1, n_heads + 1) if n_heads % hb == 0]
    # BlockSpec second-minor dim (hb*ch) must be a multiple of 8 sublanes.
    block_ok = [hb for hb in divisors if (hb * ch) % 8 == 0]
    if not block_ok:
        return n_heads   # tiny widths: last resort, let Mosaic relayout

    # Per-head slabs should sit on (pack,128) tile boundaries; if ch is not a
    # multiple of the dtype's sublane pack, only hb == 1 avoids per-head
    # relayout copies from the in-kernel (hb*ch -> hb, ch) reshape.
    if ch % pack != 0:
        layout_ok = [hb for hb in block_ok if hb == 1] or block_ok
    else:
        layout_ok = block_ok

    def step_bytes(hb):
        io = 2 * itemsize * (2 * hb * ch * length + 2 * hb * ch * kv_tile)
        scratch = 4 * (hb * ch * length + 2 * hb * length)
        scores = 8 * hb * length * kv_tile        # s + exp(s), f32
        return io + scratch + scores

    fitting = [hb for hb in layout_ok if step_bytes(hb) <= vmem_budget]
    if not fitting:
        fitting = [min(layout_ok)]

    # Only dual-TC chips (v7x) need >= num_tc independent parallel steps;
    # single-TC v5e/v6e take the biggest block that fits.
    for hb in sorted(fitting, reverse=True):
        if num_tc <= 1 or bs * (n_heads // hb) >= num_tc:
            return hb
    return max(fitting)


def _make_kv_spec(block_shape, index_map, buffered):
    """BlockSpec for a kv-streamed input, optionally 3-deep pipelined."""
    if buffered:
        try:
            return pl.BlockSpec(block_shape, index_map,
                                pipeline_mode=pl.Buffered(3))
        except Exception:
            pass   # older API without pipeline_mode/Buffered: default depth
    return pl.BlockSpec(block_shape, index_map)


def qkv_attention(qkv, n_heads, *, heads_per_block=None, kv_tile=None,
                  approx_reciprocal=True):
    """Pallas implementation of QKVAttention.forward (attention_weights=None).

    qkv: [N, 3*H*C, T]  ->  returns [N, H*C, T]
    """
    bs, width, length = qkv.shape
    assert width % (3 * n_heads) == 0
    ch = width // (3 * n_heads)
    scale = 1.0 / math.sqrt(math.sqrt(ch))
    scale2 = scale * scale

    vmem_cap, num_tc = _tpu_vmem_info()
    # ~48 MiB limit / 24 MiB picker budget on v7x, ~96 MiB / 48 MiB on v5e/v6e.
    vmem_limit = min((vmem_cap * 3) // 4, 96 * 1024 * 1024)
    picker_budget = (vmem_cap * 3) // 8

    if kv_tile is None:
        kv_tile = _pick_kv_tile(length)
    assert length % kv_tile == 0
    num_kv = length // kv_tile

    itemsize = jnp.dtype(qkv.dtype).itemsize
    if heads_per_block is None:
        heads_per_block = _pick_heads_per_block(
            bs, n_heads, ch, length, kv_tile, itemsize,
            num_tc=num_tc, vmem_budget=picker_budget)
    hb = heads_per_block
    assert n_heads % hb == 0
    G = n_heads // hb          # head groups
    cb = hb * ch               # channels per block

    # Deeper pipelining on kv-streamed inputs only pays when per-step compute
    # is short (small kv tiles) and the kv loop is long enough to fill it.
    buffered_kv = (kv_tile <= 256) and (num_kv >= 3)

    # Three views of the SAME packed qkv array: q at channel block g,
    # k at G + g, v at 2*G + g.  k/v are additionally tiled along T.
    q_spec = pl.BlockSpec((1, cb, length), lambda n, g, kv: (n, g, 0))
    k_spec = _make_kv_spec((1, cb, kv_tile),
                           lambda n, g, kv: (n, G + g, kv), buffered_kv)
    v_spec = _make_kv_spec((1, cb, kv_tile),
                           lambda n, g, kv: (n, 2 * G + g, kv), buffered_kv)
    o_spec = pl.BlockSpec((1, cb, length), lambda n, g, kv: (n, g, 0))

    kernel = functools.partial(_qkv_attn_kernel, scale2=scale2, hb=hb, ch=ch,
                               approx_recip=approx_reciprocal)

    B = bs * n_heads
    cost = pl.CostEstimate(
        flops=4 * B * ch * length * length,
        transcendentals=B * length * length,
        bytes_accessed=bs * length * itemsize * (width + n_heads * ch),
    )

    out = pl.pallas_call(
        kernel,
        out_shape=jax.ShapeDtypeStruct((bs, n_heads * ch, length), qkv.dtype),
        grid_spec=pltpu.PrefetchScalarGridSpec(
            num_scalar_prefetch=0,
            grid=(bs, G, num_kv),
            in_specs=[q_spec, k_spec, v_spec],
            out_specs=o_spec,
            scratch_shapes=[
                pltpu.VMEM((hb, 1, length), jnp.float32),   # running max
                pltpu.VMEM((hb, 1, length), jnp.float32),   # running denom
                pltpu.VMEM((hb, ch, length), jnp.float32),  # output accumulator
            ],
        ),
        compiler_params=pltpu.CompilerParams(
            # bs/G are independent ("parallel"); kv is the online-softmax
            # reduction ("arbitrary", innermost).
            dimension_semantics=("parallel", "parallel", "arbitrary"),
            vmem_limit_bytes=int(vmem_limit),
        ),
        cost_estimate=cost,
    )(qkv, qkv, qkv)

    return out


def qkv_attention_ref(qkv, n_heads):
    """Pure-JAX reference mirroring the PyTorch forward."""
    bs, width, length = qkv.shape
    ch = width // (3 * n_heads)
    scale = 1.0 / math.sqrt(math.sqrt(ch))
    q, k, v = jnp.split(qkv, 3, axis=1)
    q = q.reshape(bs * n_heads, ch, length)
    k = k.reshape(bs * n_heads, ch, length)
    v = v.reshape(bs * n_heads, ch, length)
    w = jnp.einsum('bct,bcs->bts', q * scale, k * scale)
    w = jax.nn.softmax(w.astype(jnp.float32), axis=-1).astype(w.dtype)
    a = jnp.einsum('bts,bcs->bct', w, v)
    return a.reshape(bs, -1, length)


if __name__ == "__main__":
    key = jax.random.PRNGKey(0)
    k1, k2, k3 = jax.random.split(key, 3)

    # Case 1: small shapes, single kv step, multiple heads per grid step.
    N, H, C, T = 2, 2, 8, 16
    qkv = jax.random.normal(k1, (N, 3 * H * C, T), dtype=jnp.float32)
    out = jax.block_until_ready(qkv_attention(qkv, n_heads=H))
    ref = qkv_attention_ref(qkv, n_heads=H)
    assert out.shape == (N, H * C, T), out.shape
    assert jnp.allclose(out, ref, atol=5e-3, rtol=5e-3), "case1 mismatch vs reference"

    # Case 2: exercises the multi-step (flash-style) kv loop.
    N2, H2, C2, T2 = 1, 2, 8, 256
    qkv2 = jax.random.normal(k2, (N2, 3 * H2 * C2, T2), dtype=jnp.float32)
    out2 = jax.block_until_ready(qkv_attention(qkv2, n_heads=H2, kv_tile=128))
    ref2 = qkv_attention_ref(qkv2, n_heads=H2)
    assert out2.shape == (N2, H2 * C2, T2), out2.shape
    assert jnp.allclose(out2, ref2, atol=5e-3, rtol=5e-3), "case2 mismatch vs reference"

    # Case 3: 3-step kv loop (exercises the deeper kv pipeline path) with an
    # exact reciprocal for a tight f32 check.
    N3, H3, C3, T3 = 1, 2, 8, 384
    qkv3 = jax.random.normal(k3, (N3, 3 * H3 * C3, T3), dtype=jnp.float32)
    out3 = jax.block_until_ready(
        qkv_attention(qkv3, n_heads=H3, kv_tile=128, approx_reciprocal=False))
    ref3 = qkv_attention_ref(qkv3, n_heads=H3)
    assert out3.shape == (N3, H3 * C3, T3), out3.shape
    assert jnp.allclose(out3, ref3, atol=2e-3, rtol=2e-3), "case3 mismatch vs reference"

    print("KERNEL_OK")
</pallas_src>

<mosaic_0001>
module attributes {stable_mosaic.version = 11 : i64} {
  func.func @_qkv_attn_kernel(%arg0: i32, %arg1: i32, %arg2: i32, %arg3: memref<1x16x16xf32, #tpu.memory_space<vmem>>, %arg4: memref<1x16x16xf32, #tpu.memory_space<vmem>>, %arg5: memref<1x16x16xf32, #tpu.memory_space<vmem>>, %arg6: memref<1x16x16xf32, #tpu.memory_space<vmem>>, %arg7: memref<2x1x16xf32, #tpu.memory_space<vmem>>, %arg8: memref<2x1x16xf32, #tpu.memory_space<vmem>>, %arg9: memref<2x8x16xf32, #tpu.memory_space<vmem>>) attributes {dimension_semantics = [#tpu.dimension_semantics<parallel>, #tpu.dimension_semantics<parallel>, #tpu.dimension_semantics<arbitrary>], iteration_bounds = array<i64: 2, 1, 1>, scalar_prefetch = 0 : i64, scratch_operands = 3 : i64, tpu.core_type = #tpu.core_type<tc>, window_params = [{transform_indices = @transform_0, window_bounds = array<i64: 1, 16, 16>}, {transform_indices = @transform_1, window_bounds = array<i64: 1, 16, 16>}, {transform_indices = @transform_2, window_bounds = array<i64: 1, 16, 16>}, {transform_indices = @transform_3, window_bounds = array<i64: 1, 16, 16>}]} {
    %c0_i32 = arith.constant 0 : i32
    %0 = arith.cmpi eq, %arg2, %c0_i32 : i32
    %1 = arith.extui %0 : i1 to i32
    %c0_i32_0 = arith.constant 0 : i32
    %2 = arith.cmpi ne, %1, %c0_i32_0 : i32
    scf.if %2 {
      %cst_33 = arith.constant 0xFF800000 : f32
      %40 = vector.broadcast %cst_33 : f32 to vector<2x1x16xf32>
      %c0_34 = arith.constant 0 : index
      %c0_35 = arith.constant 0 : index
      %c0_36 = arith.constant 0 : index
      %41 = vector.load %arg7[%c0_34, %c0_35, %c0_36] : memref<2x1x16xf32, #tpu.memory_space<vmem>>, vector<2x1x16xf32>
      tpu.vector_store %arg7[%c0_34, %c0_35, %c0_36], %40 {strides = array<i32>} : memref<2x1x16xf32, #tpu.memory_space<vmem>>, vector<2x1x16xf32>,
      %cst_37 = arith.constant 0.000000e+00 : f32
      %42 = vector.broadcast %cst_37 : f32 to vector<2x1x16xf32>
      %c0_38 = arith.constant 0 : index
      %c0_39 = arith.constant 0 : index
      %c0_40 = arith.constant 0 : index
      %43 = vector.load %arg8[%c0_38, %c0_39, %c0_40] : memref<2x1x16xf32, #tpu.memory_space<vmem>>, vector<2x1x16xf32>
      tpu.vector_store %arg8[%c0_38, %c0_39, %c0_40], %42 {strides = array<i32>} : memref<2x1x16xf32, #tpu.memory_space<vmem>>, vector<2x1x16xf32>,
      %cst_41 = arith.constant 0.000000e+00 : f32
      %44 = vector.broadcast %cst_41 : f32 to vector<2x8x16xf32>
      %c0_42 = arith.constant 0 : index
      %c0_43 = arith.constant 0 : index
      %c0_44 = arith.constant 0 : index
      %45 = vector.load %arg9[%c0_42, %c0_43, %c0_44] : memref<2x8x16xf32, #tpu.memory_space<vmem>>, vector<2x8x16xf32>
      tpu.vector_store %arg9[%c0_42, %c0_43, %c0_44], %44 {strides = array<i32>} : memref<2x8x16xf32, #tpu.memory_space<vmem>>, vector<2x8x16xf32>,
    } else {
    }
    %c0 = arith.constant 0 : index
    %c0_1 = arith.constant 0 : index
    %c0_2 = arith.constant 0 : index
    %3 = vector.load %arg3[%c0, %c0_1, %c0_2] : memref<1x16x16xf32, #tpu.memory_space<vmem>>, vector<1x16x16xf32>
    %4 = vector.shape_cast %3 : vector<1x16x16xf32> to vector<16x16xf32>
    %5 = vector.shape_cast %4 : vector<16x16xf32> to vector<2x8x16xf32>
    %c0_3 = arith.constant 0 : index
    %c0_4 = arith.constant 0 : index
    %c0_5 = arith.constant 0 : index
    %6 = vector.load %arg4[%c0_3, %c0_4, %c0_5] : memref<1x16x16xf32, #tpu.memory_space<vmem>>, vector<1x16x16xf32>
    %7 = vector.shape_cast %6 : vector<1x16x16xf32> to vector<16x16xf32>
    %8 = vector.shape_cast %7 : vector<16x16xf32> to vector<2x8x16xf32>
    %c0_6 = arith.constant 0 : index
    %c0_7 = arith.constant 0 : index
    %c0_8 = arith.constant 0 : index
    %9 = vector.load %arg5[%c0_6, %c0_7, %c0_8] : memref<1x16x16xf32, #tpu.memory_space<vmem>>, vector<1x16x16xf32>
    %10 = vector.shape_cast %9 : vector<1x16x16xf32> to vector<16x16xf32>
    %11 = vector.shape_cast %10 : vector<16x16xf32> to vector<2x8x16xf32>
    %cst = arith.constant 0.353553385 : f32
    %12 = vector.broadcast %cst : f32 to vector<2x8x16xf32>
    %13 = arith.mulf %8, %12 : vector<2x8x16xf32>
    "tpu.trace_start"() <{level = 10 : i32, message = "hcs,hct->hst"}> : () -> ()
    %cst_9 = arith.constant dense<0.000000e+00> : vector<2x16x16xf32>
    %14 = tpu.matmul %13, %5, %cst_9 {dimension_numbers = #tpu.dot_dimension_numbers<[1], [1], [2], [2], [0, 0, 0, 2, 1, 2], [0], [0]>} : vector<2x8x16xf32>, vector<2x8x16xf32>, vector<2x16x16xf32> -> vector<2x16x16xf32>
    "tpu.trace_stop"() : () -> ()
    %c0_10 = arith.constant 0 : index
    %c0_11 = arith.constant 0 : index
    %c0_12 = arith.constant 0 : index
    %15 = vector.load %arg7[%c0_10, %c0_11, %c0_12] : memref<2x1x16xf32, #tpu.memory_space<vmem>>, vector<2x1x16xf32>
    %cst_13 = arith.constant dense<0xFF800000> : vector<2x16xf32>
    %16 = vector.multi_reduction <maximumf>, %14, %cst_13 [1] : vector<2x16x16xf32> to vector<2x16xf32>
    %17 = vector.shape_cast %16 : vector<2x16xf32> to vector<2x1x16xf32>
    %18 = arith.maximumf %15, %17 : vector<2x1x16xf32>
    %19 = arith.subf %15, %18 : vector<2x1x16xf32>
    %20 = math.exp %19 : vector<2x1x16xf32>
    %21 = vector.broadcast %18 : vector<2x1x16xf32> to vector<2x16x16xf32>
    %22 = arith.subf %14, %21 : vector<2x16x16xf32>
    %23 = math.exp %22 : vector<2x16x16xf32>
    %c0_14 = arith.constant 0 : index
    %c0_15 = arith.constant 0 : index
    %c0_16 = arith.constant 0 : index
    %24 = vector.load %arg8[%c0_14, %c0_15, %c0_16] : memref<2x1x16xf32, #tpu.memory_space<vmem>>, vector<2x1x16xf32>
    %25 = arith.mulf %20, %24 : vector<2x1x16xf32>
    %cst_17 = arith.constant dense<0.000000e+00> : vector<2x16xf32>
    %26 = vector.multi_reduction <add>, %23, %cst_17 [1] : vector<2x16x16xf32> to vector<2x16xf32>
    %27 = vector.shape_cast %26 : vector<2x16xf32> to vector<2x1x16xf32>
    %28 = arith.addf %25, %27 : vector<2x1x16xf32>
    %c0_18 = arith.constant 0 : index
    %c0_19 = arith.constant 0 : index
    %c0_20 = arith.constant 0 : index
    %29 = vector.load %arg8[%c0_18, %c0_19, %c0_20] : memref<2x1x16xf32, #tpu.memory_space<vmem>>, vector<2x1x16xf32>
    tpu.vector_store %arg8[%c0_18, %c0_19, %c0_20], %28 {strides = array<i32>} : memref<2x1x16xf32, #tpu.memory_space<vmem>>, vector<2x1x16xf32>,
    %c0_21 = arith.constant 0 : index
    %c0_22 = arith.constant 0 : index
    %c0_23 = arith.constant 0 : index
    %30 = vector.load %arg7[%c0_21, %c0_22, %c0_23] : memref<2x1x16xf32, #tpu.memory_space<vmem>>, vector<2x1x16xf32>
    tpu.vector_store %arg7[%c0_21, %c0_22, %c0_23], %18 {strides = array<i32>} : memref<2x1x16xf32, #tpu.memory_space<vmem>>, vector<2x1x16xf32>,
    "tpu.trace_start"() <{level = 10 : i32, message = "hcs,hst->hct"}> : () -> ()
    %cst_24 = arith.constant dense<0.000000e+00> : vector<2x8x16xf32>
    %31 = tpu.matmul %11, %23, %cst_24 {dimension_numbers = #tpu.dot_dimension_numbers<[2], [1], [1], [2], [0, 0, 0, 1, 1, 2], [0], [0]>} : vector<2x8x16xf32>, vector<2x16x16xf32>, vector<2x8x16xf32> -> vector<2x8x16xf32>
    "tpu.trace_stop"() : () -> ()
    %c0_25 = arith.constant 0 : index
    %c0_26 = arith.constant 0 : index
    %c0_27 = arith.constant 0 : index
    %32 = vector.load %arg9[%c0_25, %c0_26, %c0_27] : memref<2x8x16xf32, #tpu.memory_space<vmem>>, vector<2x8x16xf32>
    %33 = vector.broadcast %20 : vector<2x1x16xf32> to vector<2x8x16xf32>
    %34 = arith.mulf %33, %32 : vector<2x8x16xf32>
    %35 = arith.addf %34, %31 : vector<2x8x16xf32>
    %c0_28 = arith.constant 0 : index
    %c0_29 = arith.constant 0 : index
    %c0_30 = arith.constant 0 : index
    %36 = vector.load %arg9[%c0_28, %c0_29, %c0_30] : memref<2x8x16xf32, #tpu.memory_space<vmem>>, vector<2x8x16xf32>
    tpu.vector_store %arg9[%c0_28, %c0_29, %c0_30], %35 {strides = array<i32>} : memref<2x8x16xf32, #tpu.memory_space<vmem>>, vector<2x8x16xf32>,
    %c0_i32_31 = arith.constant 0 : i32
    %37 = arith.cmpi eq, %arg2, %c0_i32_31 : i32
    %38 = arith.extui %37 : i1 to i32
    %c0_i32_32 = arith.constant 0 : i32
    %39 = arith.cmpi ne, %38, %c0_i32_32 : i32
    scf.if %39 {
      %c0_33 = arith.constant 0 : index
      %c0_34 = arith.constant 0 : index
      %c0_35 = arith.constant 0 : index
      %40 = vector.load %arg8[%c0_33, %c0_34, %c0_35] : memref<2x1x16xf32, #tpu.memory_space<vmem>>, vector<2x1x16xf32>
      %41 = tpu.reciprocal %40 {approx = true} : vector<2x1x16xf32> -> vector<2x1x16xf32>
      %c0_36 = arith.constant 0 : index
      %c0_37 = arith.constant 0 : index
      %c0_38 = arith.constant 0 : index
      %42 = vector.load %arg9[%c0_36, %c0_37, %c0_38] : memref<2x8x16xf32, #tpu.memory_space<vmem>>, vector<2x8x16xf32>
      %43 = vector.broadcast %41 : vector<2x1x16xf32> to vector<2x8x16xf32>
      %44 = arith.mulf %42, %43 : vector<2x8x16xf32>
      %45 = vector.shape_cast %44 : vector<2x8x16xf32> to vector<16x16xf32>
      %c0_39 = arith.constant 0 : index
      %c0_40 = arith.constant 0 : index
      %c0_41 = arith.constant 0 : index
      %46 = vector.load %arg6[%c0_39, %c0_40, %c0_41] : memref<1x16x16xf32, #tpu.memory_space<vmem>>, vector<1x16x16xf32>
      %47 = vector.shape_cast %46 : vector<1x16x16xf32> to vector<16x16xf32>
      %48 = vector.shape_cast %45 : vector<16x16xf32> to vector<1x16x16xf32>
      tpu.vector_store %arg6[%c0_39, %c0_40, %c0_41], %48 {strides = array<i32>} : memref<1x16x16xf32, #tpu.memory_space<vmem>>, vector<1x16x16xf32>,
    } else {
    }
    return
  }
  func.func @transform_0(%arg0: i32, %arg1: i32, %arg2: i32) -> (i32, i32, i32) {
    %c0_i32 = arith.constant 0 : i32
    %c0_i32_0 = arith.constant 0 : i32
    return %arg0, %arg1, %c0_i32 : i32, i32, i32
  }
  func.func @transform_1(%arg0: i32, %arg1: i32, %arg2: i32) -> (i32, i32, i32) {
    %c1_i32 = arith.constant 1 : i32
    %0 = arith.addi %c1_i32, %arg1 : i32
    %c0_i32 = arith.constant 0 : i32
    return %arg0, %0, %arg2 : i32, i32, i32
  }
  func.func @transform_2(%arg0: i32, %arg1: i32, %arg2: i32) -> (i32, i32, i32) {
    %c2_i32 = arith.constant 2 : i32
    %0 = arith.addi %c2_i32, %arg1 : i32
    %c0_i32 = arith.constant 0 : i32
    return %arg0, %0, %arg2 : i32, i32, i32
  }
  func.func @transform_3(%arg0: i32, %arg1: i32, %arg2: i32) -> (i32, i32, i32) {
    %c0_i32 = arith.constant 0 : i32
    %c0_i32_0 = arith.constant 0 : i32
    return %arg0, %arg1, %c0_i32 : i32, i32, i32
  }
}

</mosaic_0001>

<bundles_post_ra>
// kernel: tpu_custom_call.1
= control target key start
LH: loop header
LB: loop body
LE: loop exit
PB: predicated region body
PF: predicated region fallthrough
CT: control target
= control target key end

     0   :  { %8 = vsyncpa [#allocation6], 0  ;;  %s1387_s0 = inlined_call_operand.vmem [shape: f32[2,48,16], index: 0, kind: input, shape index: {}]   ;;  %s1388_s1 = inlined_call_operand.vmem [shape: f32[2,48,16], index: 1, kind: input, shape index: {}]   ;;  %s1389_s2 = inlined_call_operand.vmem [shape: f32[2,48,16], index: 2, kind: input, shape index: {}]   ;;  %s1390_s3 = inlined_call_operand.hbm [shape: f32[2,16,16], index: 3, kind: output, shape index: {}]  }
   0x1   :  { %10 = vsyncpa [#allocation6 + $0x1], 0  ;;  %s1229_s12 = smov 0   ;;  %s1231_s13 = smov 0  }
   0x2   :  { %s1233_s14 = smov 0   ;;  %s1235_s15 = smov 0  }
   0x3   :  { %s1237_s16 = smov 0   ;;  %s1239_s17 = smov 0  }
   0x4 LB: > { %s975_s18 = sadd.s32 4294967295, %s1200_s17   ;;  %s976_s19 = sadd.s32 4294967294, %s1200_s17   ;;  %s1200_s17 = sphi %s1239_s17, %s16_s17   ;;  %s1196_s16 = sphi %s1237_s16, %s1397_s16   ;;  %s1192_s15 = sphi %s1235_s15, %s1396_s15   ;;  %s1188_s14 = sphi %s1233_s14, %s1395_s14   ;;  %s1184_s13 = sphi %s1231_s13, %s1394_s13   ;;  %s1180_s12 = sphi %s1229_s12, %s1393_s12  }
   0x5   : > { %s35_s20 = sadd.s32 1, %s1196_s16  ;;  %s136_s21 = sadd.s32 1, %s1188_s14 }
   0x6   : > { %p37_p0 = scmp.ge.s32.totalorder %s35_s20, 2  ;;  %p146_p1 = scmp.ne.s32.totalorder %s1188_s14, %s1184_s13 }
   0x7   : > { %p147_p2 = scmp.eq.s32.totalorder %s975_s18, 1  ;;  %p152_p3 = scmp.ne.s32.totalorder %s1184_s13, %s1180_s12 }
   0x8   : > { %s1399_s20 = smov (%p37_p0, %s35_s20), 0  ;;  %p153_p5 = scmp.eq.s32.totalorder %s976_s19, 1 }
   0x9   : > { %p1269_p4 = por %p147_p2, %p146_p1  ;;  %s131_s23 = ssub.s32 %s1196_s16, %s1399_s20 }
   0xa   : > { %p979_p6 = scmp.ge.s32.totalorder %s1200_s17, 1  ;;  %p134_p7 = scmp.eq.s32.totalorder %s131_s23, 0 }
   0xb   : > { %p1276_p8 = por %p153_p5, %p152_p3  ;;  %p220_p9 = scmp.lt.s32.totalorder %s1200_s17, 3 }
   0xc   : > { %s1282_s25 = scalar_select %p134_p7, %s1188_s14, %s136_s21  }
   0xd   : > { %p221_p10 = pnand %p979_p6, %p220_p9 }
   0xe   : > { %p275_p11 = scmp.lt.s32.totalorder (!%p221_p10), %s1192_s15, 1  ;;  %vm367_vm0 = vcmask (!%p221_p10), 64512   ;;  %vm319_vm1 = vcmask (!%p221_p10), 122880   ;;  %v1202_v10 = vmov (!%p221_p10), -inf   ;;  %vm324_vm2 = vcmask (!%p221_p10), 130048   ;;  %s271_s18 = sand.u32 (!%p221_p10), 1, %s1184_s13  }
   0xf   : > { %224 = sbr.rel (%p221_p10) target bundleno = 664 (0x298), region = 32  ;;  %320 = vst.msk [vmem:[#allocation2] sm:$0x1] (!%p221_p10), %vm319_vm1, %v1202_v10  ;;  %321 = vst.msk [vmem:[#allocation2 + $0x1] sm:$0x1] (!%p221_p10), %vm319_vm1, %v1202_v10  ;;  %v1203_v11 = vmov (!%p221_p10), 0.0   ;;  %v593_v20 = vlaneseq (!%p221_p10) }
  0x10   : > { %322 = vst.msk [vmem:[#allocation3] sm:$0x1] (!%p221_p10), %vm319_vm1, %v1203_v11  ;;  %323 = vst.msk [vmem:[#allocation3 + $0x1] sm:$0x1] (!%p221_p10), %vm319_vm1, %v1203_v11  ;;  %v1204_v12 = vmov (!%p221_p10), 0.0|0.0   ;;  %vm1205_vm3 = vmmov (!%p221_p10), 0  }
  0x11   : > { %325 = vst.msk [vmem:[#allocation4] sm:$0xff] (!%p221_p10), %vm324_vm2, %v1203_v11  ;;  %326 = vst.msk [vmem:[#allocation4 + $0x8] sm:$0xff] (!%p221_p10), %vm324_vm2, %v1203_v11  ;;  %v594_v27 = vshrl.u32 (!%p221_p10), %v593_v20, 7  ;;  %s980_s19 = sshll.u32 (!%p221_p10), %s271_s18, 4  ;;  %s999_s23 = sshll.u32 (!%p221_p10), %s1192_s15, 8 }
  0x12   : > { %s273_s21 = scalar_lea.vmem (!%p221_p10), [#allocation5], %s980_s19  ;;  %s1336_s29 = scalar_lea.hbm (!%p221_p10), %s1390_s3, %s999_s23 }
  0x13   : > { %v1306_v33 = vsub.s32 (!%p221_p10), 0, %v594_v27  ;;  %s1341_s30 = scalar_lea.sflag (!%p221_p10), [#allocation6], %s271_s18 }
  0x16   : > { %s276_s26 = scalar_select %p275_p11, %s1192_s15, 1  ;;  %v562_v31 = vld [vmem:[#allocation2] sm:$0x1]  ;;  %v563_v44 = vld [vmem:[#allocation2 + $0x1] sm:$0x1] }
  0x18   : > { %s1286_s27 = smul.u32 48, %s276_s26  ;;  %s851_s26 = sshll.u32 %s273_s21, 4  ;;  %s1338_s26 = int_to_ptr.vmem [resolvable:$true] %s851_s26 }
  0x19   : > { %s1122_s15 = scalar_lea.vmem %s1338_s26, 256 }
  0x1a   : > { %s996_s28 = sadd.s32 16, %s1286_s27  ;;  %s282_s7 = scalar_lea.vmem %s1387_s0, %s1286_s27 }
  0x1b   : > { %s296_s4 = scalar_lea.vmem %s1388_s1, %s996_s28  ;;  %v327_v4 = vld [vmem:[%s282_s7] sm:$0xff]  ;;  %v328_v5 = vld [vmem:[%s282_s7 + $0x8] sm:$0xff]  ;;  %s998_s8 = sadd.s32 32, %s1286_s27 }
  0x1c   : > { %v329_v0 = vld [vmem:[%s296_s4] sm:$0xff]  ;;  %v330_v2 = vld [vmem:[%s296_s4 + $0x8] sm:$0xff]  ;;  %1012 = vmatprep.subr.mxu0 %v327_v4  ;;  %1017 = vmatprep.subr.mxu1 %v328_v5  ;;  %s311_s11 = scalar_lea.vmem %s1389_s2, %s998_s8  ;;  %p1123_p12 = scmp.ne.s32.totalorder %s1338_s26, %s1122_s15 }
  0x1d   : > { %v333_v1 = vmul.f32 0.35355338, %v329_v0  ;;  %v334_v3 = vmul.f32 0.35355338, %v330_v2  ;;  %1013 = vmatpush3.msra.mxu0 %v327_v4  ;;  %1018 = vmatpush3.msra.mxu1 %v328_v5  ;;  %v331_v0 = vld [vmem:[%s311_s11] sm:$0xff]  ;;  %s1206_s4 = smov [#allocation5]  }
  0x1e   : > { %1036 = vmatprep.subr.bf16.mxu0 %v1204_v12  ;;  %1039 = vmatprep.subr.bf16.mxu1 %v1204_v12  ;;  %p1124_p13 = pnand %p1123_p12, %p1269_p4  ;;  %s1126_s5 = sshll.u32 %s1206_s4, 4  ;;  %s1127_s5 = int_to_ptr.vmem [resolvable:$false] %s1126_s5 }
  0x1f   : > { %335 = vxpose.xlu0.b32.start.end [1/1] (short) (narrow) %v333_v1, 16  ;;  %s1128_s6 = scalar_lea.vmem %s1127_s5, 512  ;;  %p1129_p1 = scmp.lt.s32.totalorder %s1338_s26, %s1127_s5 }
  0x20   : > { %p1125_p0 = pneg %p1124_p13  ;;  %p1130_p2 = scmp.lt.s32.totalorder %s1128_s6, %s1122_s15 }
  0x22   : > { %p1131_p3 = por %p1130_p2, %p1129_p1 }
  0x24   : > { %449 = vxpose.xlu0.b32.start.end [1/1] (short) (narrow) %v334_v3, 16  ;;  %p1132_p5 = pnand %p1131_p3, %p1125_p0 }
  0x9f   : > { %v351_v6 = vpop.trf.xlu0 }
  0xa0   : > { %1014 = vmatprep.mubr.msk.f32.mxu0 %vm367_vm0, %v351_v6 }
  0xa3   : > { %v352_v7 = vpop.trf.xlu0 }
  0xa4   : > { %1015 = vmatmul.mubr.msk.f32.vlgmr.msra.gmra.mrb[0].mxu0 %vm367_vm0, %v352_v7 }
  0xa5   : > { %1026 = vmatprep.mubr.msk.f32.mxu0 %vm1205_vm3, %v1203_v11 }
  0xa7   : > { %v465_v8 = vpop.trf.xlu0 }
  0xa8   : > { %1019 = vmatprep.mubr.msk.f32.mxu1 %vm367_vm0, %v465_v8 }
  0xab   : > { %v466_v9 = vpop.trf.xlu0 }
  0xac   : > { %1020 = vmatmul.mubr.msk.f32.vlgmr.msra.gmra.mrb[0].mxu1 %vm367_vm0, %v466_v9 }
  0xad   : > { %1033 = vmatprep.mubr.msk.f32.mxu1 %vm1205_vm3, %v1203_v11 }
 0x177   : > { %v1016_v13 = vpop.f32.mrb[0].mxu0 }
 0x178   : > { %v566_v14 = vsel %vm324_vm2, %v1016_v13, -inf  ;;  %v440_v15 = vpop.f32.mrb[1].mxu0 }
 0x179   : > { %v565_v16 = vsel %vm324_vm2, %v440_v15, -inf }
 0x17a   : > { %v567_v17 = vmax.f32 %v565_v16, %v566_v14  ;;  %v332_v14 = vld [vmem:[%s311_s11 + $0x8] sm:$0xff] }
 0x17c   : > { %v568_v18 = vrot.slane %v567_v17, 4 }
 0x17e   : > { %v569_v19 = vmax.f32 %v567_v17, %v568_v18 }
 0x17f   : > { %v1021_v21 = vpop.f32.mrb[0].mxu1 }
 0x180   : > { %v570_v22 = vrot.slane %v569_v19, 2  ;;  %v575_v23 = vsel %vm324_vm2, %v1021_v21, -inf  ;;  %v553_v24 = vpop.f32.mrb[1].mxu1 }
 0x181   : > { %v574_v25 = vsel %vm324_vm2, %v553_v24, -inf }
 0x182   : > { %v571_v26 = vmax.f32 %v569_v19, %v570_v22  ;;  %v576_v28 = vmax.f32 %v574_v25, %v575_v23  ;;  %v616_v23 = vld [vmem:[#allocation3 + $0x1] sm:$0x1] }
 0x184   : > { %v572_v29 = vrot.slane %v571_v26, 1  ;;  %v577_v30 = vrot.slane %v576_v28, 4 }
 0x186   : > { %v573_v32 = vmax.f32 %v571_v26, %v572_v29  ;;  %v578_v34 = vmax.f32 %v576_v28, %v577_v30  ;;  %v790_v29 = vld [vmem:[#allocation4] sm:$0xff] }
 0x188   : > { %v583_v35 = vmax.f32 %v562_v31, %v573_v32  ;;  %v579_v36 = vrot.slane %v578_v34, 2 }
 0x18a   : > { %v585_v37 = vsub.f32 %v562_v31, %v583_v35  ;;  %v596_v38 = vrot.slane %v583_v35, %v1306_v33  ;;  %642 = vst.msk [vmem:[#allocation2] sm:$0x1] %vm319_vm1, %v583_v35  ;;  %v580_v39 = vmax.f32 %v578_v34, %v579_v36  ;;  %v791_v36 = vld [vmem:[#allocation4 + $0x8] sm:$0xff] }
 0x18c   : > { %v587_v40 = vmul.f32 1.442695, %v585_v37  ;;  %v603_v41 = vsub.f32 %v440_v15, %v596_v38  ;;  %v604_v42 = vsub.f32 %v1016_v13, %v596_v38  ;;  %v581_v43 = vrot.slane %v580_v39, 1  ;;  %v615_v13 = vld [vmem:[#allocation3] sm:$0x1] }
 0x18e   : > { %1106 = vpow2.f32 %v587_v40  ;;  %v607_v45 = vmul.f32 1.442695, %v603_v41  ;;  %v609_v46 = vmul.f32 1.442695, %v604_v42  ;;  %v582_v47 = vmax.f32 %v580_v39, %v581_v43 }
 0x190   : > { %1108 = vpow2.f32 %v607_v45  ;;  %v584_v48 = vmax.f32 %v563_v44, %v582_v47 }
 0x191   : > { %1110 = vpow2.f32 %v609_v46 }
 0x192   : > { %v586_v49 = vsub.f32 %v563_v44, %v584_v48  ;;  %v600_v50 = vrot.slane %v584_v48, %v1306_v33  ;;  %643 = vst.msk [vmem:[#allocation2 + $0x1] sm:$0x1] %vm319_vm1, %v584_v48 }
 0x194   : > { %v589_v51 = vmul.f32 1.442695, %v586_v49  ;;  %v605_v52 = vsub.f32 %v553_v24, %v600_v50  ;;  %v606_v53 = vsub.f32 %v1021_v21, %v600_v50 }
 0x196   : > { %1112 = vpow2.f32 %v589_v51  ;;  %v611_v54 = vmul.f32 1.442695, %v605_v52  ;;  %v613_v55 = vmul.f32 1.442695, %v606_v53 }
 0x198   : > { %v1107_v56 = vpop.eup %1106  ;;  %1114 = vpow2.f32 %v611_v54 }
 0x199   : > { %1116 = vpow2.f32 %v613_v55  ;;  %v797_v57 = vrot.slane %v1107_v56, %v1306_v33  ;;  %v617_v19 = vmul.f32 %v1107_v56, %v615_v13 }
 0x19a   : > { %v1109_v58 = vpop.eup %1108 }
 0x19b   : > { %v1111_v59 = vpop.eup %1110  ;;  %v619_v60 = vsel %vm324_vm2, %v1109_v58, 0.0  ;;  %v804_v30 = vmul.f32 %v797_v57, %v790_v29 }
 0x19c   : > { %v620_v61 = vsel %vm324_vm2, %v1111_v59, 0.0  ;;  %v1037_v62 = vpack.c.bf16 %v1111_v59, %v1109_v58 }
 0x19d   : > { %v621_v63 = vadd.f32 %v620_v61, %v619_v60 }
 0x19e   : > { %1038 = vmatpush3.bf16.msra.mxu0 %v1037_v62 }
 0x19f   : > { %v622_v1 = vrot.slane %v621_v63, 4 }
 0x1a0   : > { %v1113_v2 = vpop.eup %1112 }
 0x1a1   : > { %v623_v3 = vadd.f32 %v622_v1, %v621_v63  ;;  %1027 = vmatmul.mubr.msk.f32.vlgmr.msra.gmra.mrb[2].mxu0 %vm324_vm2, %v331_v0  ;;  %v801_v4 = vrot.slane %v1113_v2, %v1306_v33  ;;  %v618_v26 = vmul.f32 %v1113_v2, %v616_v23 }
 0x1a2   : > { %v1115_v5 = vpop.eup %1114 }
 0x1a3   : > { %v1117_v6 = vpop.eup %1116  ;;  %v624_v7 = vrot.slane %v623_v3, 2  ;;  %v628_v8 = vsel %vm324_vm2, %v1115_v5, 0.0  ;;  %v805_v38 = vmul.f32 %v801_v4, %v791_v36 }
 0x1a4   : > { %v629_v9 = vsel %vm324_vm2, %v1117_v6, 0.0  ;;  %v1040_v10 = vpack.c.bf16 %v1117_v6, %v1115_v5 }
 0x1a5   : > { %v625_v11 = vadd.f32 %v624_v7, %v623_v3  ;;  %v630_v12 = vadd.f32 %v629_v9, %v628_v8 }
 0x1a6   : > { %1041 = vmatpush3.bf16.msra.mxu1 %v1040_v10 }
 0x1a7   : > { %v626_v15 = vrot.slane %v625_v11, 1  ;;  %v631_v16 = vrot.slane %v630_v12, 4 }
 0x1a9   : > { %v627_v17 = vadd.f32 %v626_v15, %v625_v11  ;;  %v632_v18 = vadd.f32 %v631_v16, %v630_v12  ;;  %1034 = vmatmul.mubr.msk.f32.vlgmr.msra.gmra.mrb[2].mxu1 %vm324_vm2, %v332_v14 }
 0x1ab   : > { %v633_v20 = vrot.slane %v632_v18, 2  ;;  %v637_v21 = vadd.f32 %v627_v17, %v617_v19 }
 0x1ad   : > { %v634_v22 = vadd.f32 %v633_v20, %v632_v18  ;;  %640 = vst.msk [vmem:[#allocation3] sm:$0x1] %vm319_vm1, %v637_v21 }
 0x1af   : > { %v635_v24 = vrot.slane %v634_v22, 1 }
 0x1b1   : > { %v636_v25 = vadd.f32 %v635_v24, %v634_v22 }
 0x1b3   : > { %v638_v27 = vadd.f32 %v636_v25, %v618_v26 }
 0x1b4   : > { %v813_v28 = vld [vmem:[#allocation3] sm:$0x1] }
 0x1b5   : > { %641 = vst.msk [vmem:[#allocation3 + $0x1] sm:$0x1] %vm319_vm1, %v638_v27  ;;  %1118 = vrcp.f32 %v813_v28 }
 0x1bc   : > { %v814_v35 = vld [vmem:[#allocation3 + $0x1] sm:$0x1] }
 0x1bd   : > { %1120 = vrcp.f32 %v814_v35 }
 0x1bf   : > { %v1119_v37 = vpop.eup %1118 }
 0x1c0   : > { %v824_v42 = vrot.slane %v1119_v37, %v1306_v33 }
 0x1c7   : > { %v1121_v45 = vpop.eup %1120 }
 0x1c8   : > { %v828_v46 = vrot.slane %v1121_v45, %v1306_v33 }
 0x274   : > { %v713_v31 = vpop.f32.mrb[2].mxu0 }
 0x275   : > { %v806_v32 = vadd.f32 %v804_v30, %v713_v31  ;;  %v1028_v34 = vpop.f32.mrb[3].mxu0 }
 0x277   : > { %808 = vst.msk [vmem:[#allocation4] sm:$0xff] %vm324_vm2, %v806_v32 }
 0x27c   : > { %v786_v39 = vpop.f32.mrb[2].mxu1 }
 0x27d   : > { %v807_v40 = vadd.f32 %v805_v38, %v786_v39  ;;  %v1035_v41 = vpop.f32.mrb[3].mxu1 }
 0x27e   : > { %v817_v43 = vld [vmem:[#allocation4] sm:$0xff] }
 0x27f   : > { %809 = vst.msk [vmem:[#allocation4 + $0x8] sm:$0xff] %vm324_vm2, %v807_v40  ;;  %v831_v44 = vmul.f32 %v824_v42, %v817_v43 }
 0x281   : > { %833 = vst.msk [vmem:[%s273_s21] sm:$0xff] %vm324_vm2, %v831_v44 }
 0x286   : > { %v818_v47 = vld [vmem:[#allocation4 + $0x8] sm:$0xff] }
 0x287   : > { %v832_v48 = vmul.f32 %v828_v46, %v818_v47 }
 0x289   : > { %834 = vst.msk [vmem:[%s273_s21 + $0x8] sm:$0xff] %vm324_vm2, %v832_v48 }
 0x28a   : > { %1135 = shalt.err (!%p1132_p5)
}
 0x28b   : > { %s1136_s7 = scalar_lea.hbm %s1336_s29, 256  ;;  %s1140_s10 = scalar_lea.hbm %s1390_s3, 512 }
 0x28c   : > { %p1137_p6 = scmp.ne.s32.totalorder %s1336_s29, %s1136_s7  ;;  %p1141_p10 = scmp.lt.u32.totalorder %s1336_s29, %s1390_s3 }
 0x28d   : > { %p1142_p11 = scmp.lt.u32.totalorder %s1140_s10, %s1136_s7  ;;  %p1144_p13 = scmp.lt.u32.totalorder %s1136_s7, %s1336_s29 }
 0x28e   : > { %p1138_p7 = pnand %p1137_p6, %p1269_p4 }
 0x28f   : > { %p1143_p12 = por %p1142_p11, %p1141_p10 }
 0x290   : > { %p1139_p9 = pneg %p1138_p7 }
 0x291   : > { %p1145_p0 = por %p1144_p13, %p1143_p12 }
 0x293   : > { %p1146_p1 = pnand %p1145_p0, %p1139_p9 }
 0x295   : > { %1149 = shalt.err (!%p1146_p1)
}
 0x296   : > { %s1207_s19 = smov 128   ;;  %s1208_s21 = smov 8  }
 0x297   : > { %1044 = dma.vmem_to_hbm [thread:$0]  (%p1269_p4), %s1338_s26, 256, %s1336_s29, %s1341_s30, %s1207_s19, %s1207_s19, %s1208_s21  }
 0x298 PF: > { %p1051_p2 = scmp.ge.s32.totalorder %s1200_s17, 2  ;;  %s866_s23 = sand.u32 1, %s1180_s12  }
 0x299   : > { %s867_s27 = scalar_lea.sflag [#allocation6], %s866_s23 }
 0x29a   : > { %p1047_p3 = pnand %p1051_p2, %p1276_p8 }
 0x29c   : > { %1175 = dma.done.wait (!%p1047_p3), %s867_s27, 256  }
 0x29d   : > { %1177 = vsyncadd (!%p1047_p3), %s867_s27, 4294967040  ;;  %s16_s17 = sadd.s32 1, %s1200_s17   ;;  %s1393_s12 = smov %s1184_s13 }
 0x29e   : > { %p13_p5 = scmp.ge.s32.totalorder %s16_s17, 4   ;;  %s1394_s13 = smov %s1188_s14 }
 0x29f   : > { %s1395_s14 = smov %s1282_s25  ;;  %s1396_s15 = smov %s1196_s16 }
 0x2a0   : > { %s1397_s16 = smov %s1399_s20  ;;  %15 = sbr.rel (!%p13_p5) target bundleno = 4 (0x4), region = 81 }
 0x2a7   :  { %872 = vsyncpa [#allocation6], 1 }
 0x2a8   :  { %874 = vsyncpa [#allocation6 + $0x1], 1 }

</bundles_post_ra>
